<compile_context>
chip_gen: v6e
topology: v6e:2x2x1
jax: 0.10.0
libtpu: 0.0.40
codegen_flags: <defaults>
</compile_context>

<pallas_src>
import functools

import jax
import jax.numpy as jnp
from jax.experimental import pallas as pl
from jax.experimental.pallas import tpu as pltpu


NUM_HEADS = 10          # logical number of heads (output columns)
PADDED_HEADS = 128      # lane-dense padded head dim (one full lane tile)


def _heads_kernel(x_ref, w_ref, b_ref, o_ref):
    # x_ref: (TB, F) in VMEM (native dtype), w_ref: (F, 128) (native dtype),
    # b_ref: (1, 128) f32, o_ref: (TB, 128) f32.
    # MXU accumulates in f32; bias add on VPU (huge slack), no extra casts.
    acc = jnp.dot(x_ref[...], w_ref[...], preferred_element_type=jnp.float32)
    o_ref[...] = (acc + b_ref[...]).astype(o_ref.dtype)


def _round_up(n, m):
    return ((n + m - 1) // m) * m


@functools.partial(jax.jit, static_argnames=("block_b", "out_dtype"))
def custom_cvt_heads(x, w_padded, b_padded, *, block_b=2048, out_dtype=jnp.float32):
    """Apply the 10 stacked heads.

    x:        (B, F) backbone features (f32 or bf16).
    w_padded: (F, 128) head weights, columns [NUM_HEADS:] are zero (init-time pad).
    b_padded: (1, 128) f32 head biases, columns [NUM_HEADS:] are zero.
    returns:  (B, NUM_HEADS) in `out_dtype`, matching torch.cat([head_i(x)], dim=-1).

    block_b: batch tile. 2048 is a good default on v5e/v6e; on v7x (3.2 TB/s HBM
    per TC) pass 4096 and keep B large enough for >=2 grid steps so the
    "parallel" batch axis can shard across the 2 TensorCores.
    """
    B, F = x.shape
    assert w_padded.shape == (F, PADDED_HEADS)
    assert b_padded.shape == (1, PADDED_HEADS)

    # Batch tile: multiple of 8 sublanes, never larger than needed for B.
    tb = min(block_b, _round_up(B, 8))
    tb = _round_up(tb, 8)
    grid_b = pl.cdiv(B, tb)  # ragged last block: OOB rows masked on write

    # Double-buffered VMEM footprint estimate; only raise the scoped-VMEM limit
    # when a caller pushes block_b past what the v5e 16 MiB default can hold.
    vmem_est = (
        2 * tb * F * x.dtype.itemsize
        + 2 * tb * PADDED_HEADS * jnp.dtype(out_dtype).itemsize
        + 2 * F * PADDED_HEADS * w_padded.dtype.itemsize
        + 2 * PADDED_HEADS * b_padded.dtype.itemsize
    )
    vmem_limit = int(vmem_est + (4 << 20)) if vmem_est > (12 << 20) else None

    out = pl.pallas_call(
        _heads_kernel,
        out_shape=jax.ShapeDtypeStruct((B, PADDED_HEADS), out_dtype),
        grid_spec=pltpu.PrefetchScalarGridSpec(
            num_scalar_prefetch=0,
            grid=(grid_b,),
            in_specs=[
                pl.BlockSpec((tb, F), lambda i: (i, 0)),              # x: streamed
                pl.BlockSpec((F, PADDED_HEADS), lambda i: (0, 0)),    # W: resident
                pl.BlockSpec((1, PADDED_HEADS), lambda i: (0, 0)),    # bias: resident
            ],
            out_specs=pl.BlockSpec((tb, PADDED_HEADS), lambda i: (i, 0)),
        ),
        compiler_params=pltpu.CompilerParams(
            dimension_semantics=("parallel",),
            vmem_limit_bytes=vmem_limit,
        ),
    )(x, w_padded, b_padded)

    # Only the first 10 lanes are meaningful; no row slicing needed (no batch pad).
    return out[:, :NUM_HEADS]


def init_head_params(key, in_features=384, dtype=jnp.float32):
    """Deterministic init mimicking torch.nn.Linear default (U[-k, k], k=1/sqrt(fan_in)).

    The 10 heads' weight rows are stacked as columns of a single
    (in_features, NUM_HEADS) matrix, then zero-padded once to (in_features, 128)
    (free compute, lane-dense layout in-kernel). Bias is stored pre-cast to f32
    so the kernel adds it directly to the f32 MXU accumulator.
    """
    k = 1.0 / jnp.sqrt(jnp.asarray(in_features, jnp.float32))
    kw, kb = jax.random.split(key)
    w = jax.random.uniform(kw, (in_features, NUM_HEADS), jnp.float32, minval=-k, maxval=k)
    b = jax.random.uniform(kb, (NUM_HEADS,), jnp.float32, minval=-k, maxval=k)

    w = w.astype(dtype)
    w_padded = jnp.zeros((in_features, PADDED_HEADS), dtype).at[:, :NUM_HEADS].set(w)
    b_padded = jnp.zeros((1, PADDED_HEADS), jnp.float32).at[0, :NUM_HEADS].set(b)
    return w, b, w_padded, b_padded


if __name__ == "__main__":
    key = jax.random.PRNGKey(0)
    k_x, k_p, k_x2, k_x3 = jax.random.split(key, 4)

    B, F = 8, 384  # small batch of backbone feature vectors, in_features=384
    x = jax.random.normal(k_x, (B, F), jnp.float32)
    w, b, w_padded, b_padded = init_head_params(k_p, in_features=F)

    out = jax.block_until_ready(custom_cvt_heads(x, w_padded, b_padded))
    ref = x @ w + b[None, :]
    assert out.shape == (B, NUM_HEADS)
    assert out.dtype == jnp.float32
    assert jnp.allclose(out, ref, atol=1e-5, rtol=1e-5)

    # Multi-step grid with a ragged (masked-write) last block: B=40, tb=16 -> 3 steps.
    B2 = 40
    x2 = jax.random.normal(k_x2, (B2, F), jnp.float32)
    out2 = jax.block_until_ready(custom_cvt_heads(x2, w_padded, b_padded, block_b=16))
    ref2 = x2 @ w + b[None, :]
    assert out2.shape == (B2, NUM_HEADS)
    assert jnp.allclose(out2, ref2, atol=1e-5, rtol=1e-5)

    # Row count not a multiple of 8: single ragged block, OOB rows masked on write.
    B3 = 13
    x3 = jax.random.normal(k_x3, (B3, F), jnp.float32)
    out3 = jax.block_until_ready(custom_cvt_heads(x3, w_padded, b_padded, block_b=16))
    ref3 = x3 @ w + b[None, :]
    assert out3.shape == (B3, NUM_HEADS)
    assert jnp.allclose(out3, ref3, atol=1e-5, rtol=1e-5)

    # bf16 feature path (halves the dominant HBM read); f32 MXU accumulation,
    # f32 output (matches the PyTorch heads' dtype).
    xb = x.astype(jnp.bfloat16)
    wb_padded = w_padded.astype(jnp.bfloat16)
    outb = jax.block_until_ready(custom_cvt_heads(xb, wb_padded, b_padded))
    refb = (xb.astype(jnp.float32)
            @ wb_padded.astype(jnp.float32)[:, :NUM_HEADS]
            + b[None, :])
    assert outb.shape == (B, NUM_HEADS)
    assert outb.dtype == jnp.float32
    assert jnp.allclose(outb, refb, atol=1e-2, rtol=1e-2)

    print("KERNEL_OK")
</pallas_src>

<mosaic_0001>
module attributes {stable_mosaic.version = 11 : i64} {
  func.func @_heads_kernel(%arg0: i32, %arg1: memref<8x384xf32, #tpu.memory_space<vmem>>, %arg2: memref<384x128xf32, #tpu.memory_space<vmem>>, %arg3: memref<1x128xf32, #tpu.memory_space<vmem>>, %arg4: memref<8x128xf32, #tpu.memory_space<vmem>>) attributes {dimension_semantics = [#tpu.dimension_semantics<parallel>], iteration_bounds = array<i64: 1>, scalar_prefetch = 0 : i64, scratch_operands = 0 : i64, tpu.core_type = #tpu.core_type<tc>, window_params = [{transform_indices = @transform_0, window_bounds = array<i64: 8, 384>}, {pipeline_mode = #tpu.pipeline_mode<synchronous>, transform_indices = @transform_1, window_bounds = array<i64: 384, 128>}, {pipeline_mode = #tpu.pipeline_mode<synchronous>, transform_indices = @transform_2, window_bounds = array<i64: 1, 128>}, {transform_indices = @transform_3, window_bounds = array<i64: 8, 128>}]} {
    %c0 = arith.constant 0 : index
    %c0_0 = arith.constant 0 : index
    %0 = vector.load %arg1[%c0, %c0_0] : memref<8x384xf32, #tpu.memory_space<vmem>>, vector<8x384xf32>
    %c0_1 = arith.constant 0 : index
    %c0_2 = arith.constant 0 : index
    %1 = vector.load %arg2[%c0_1, %c0_2] : memref<384x128xf32, #tpu.memory_space<vmem>>, vector<384x128xf32>
    %cst = arith.constant dense<0.000000e+00> : vector<8x128xf32>
    %2 = tpu.matmul %0, %1, %cst {dimension_numbers = #tpu.dot_dimension_numbers<[1], [0], [0], [1], [0, 0, 1, 1], [], []>} : vector<8x384xf32>, vector<384x128xf32>, vector<8x128xf32> -> vector<8x128xf32>
    %c0_3 = arith.constant 0 : index
    %c0_4 = arith.constant 0 : index
    %3 = vector.load %arg3[%c0_3, %c0_4] : memref<1x128xf32, #tpu.memory_space<vmem>>, vector<1x128xf32>
    %4 = vector.broadcast %3 : vector<1x128xf32> to vector<8x128xf32>
    %5 = arith.addf %2, %4 : vector<8x128xf32>
    %c0_5 = arith.constant 0 : index
    %c0_6 = arith.constant 0 : index
    %6 = vector.load %arg4[%c0_5, %c0_6] : memref<8x128xf32, #tpu.memory_space<vmem>>, vector<8x128xf32>
    tpu.vector_store %arg4[%c0_5, %c0_6], %5 {strides = array<i32>} : memref<8x128xf32, #tpu.memory_space<vmem>>, vector<8x128xf32>,
    return
  }
  func.func @transform_0(%arg0: i32) -> (i32, i32) {
    %c0_i32 = arith.constant 0 : i32
    %c0_i32_0 = arith.constant 0 : i32
    return %arg0, %c0_i32 : i32, i32
  }
  func.func @transform_1(%arg0: i32) -> (i32, i32) {
    %c0_i32 = arith.constant 0 : i32
    %c0_i32_0 = arith.constant 0 : i32
    %c0_i32_1 = arith.constant 0 : i32
    return %c0_i32, %c0_i32_0 : i32, i32
  }
  func.func @transform_2(%arg0: i32) -> (i32, i32) {
    %c0_i32 = arith.constant 0 : i32
    %c0_i32_0 = arith.constant 0 : i32
    %c0_i32_1 = arith.constant 0 : i32
    return %c0_i32, %c0_i32_0 : i32, i32
  }
  func.func @transform_3(%arg0: i32) -> (i32, i32) {
    %c0_i32 = arith.constant 0 : i32
    %c0_i32_0 = arith.constant 0 : i32
    return %arg0, %c0_i32 : i32, i32
  }
}

</mosaic_0001>

<bundles_post_ra>
// kernel: custom_cvt_heads.1
= control target key start
LH: loop header
LB: loop body
LE: loop exit
PB: predicated region body
PF: predicated region fallthrough
CT: control target
= control target key end

     0   :  { %8 = vsyncpa [#allocation3], 0  ;;  %s473_s0 = inlined_call_operand.hbm [shape: f32[8,384], index: 0, kind: input, shape index: {}]   ;;  %s474_s1 = inlined_call_operand.hbm [shape: f32[384,128], index: 1, kind: input, shape index: {}]   ;;  %s475_s2 = inlined_call_operand.vmem [shape: f32[1,128], index: 2, kind: input, shape index: {}]   ;;  %s476_s3 = inlined_call_operand.hbm [shape: f32[8,128], index: 3, kind: output, shape index: {}]  }
   0x1   :  { %9 = vsyncpa [#allocation6], 0 }
   0x2   :  { %10 = vsyncpa [#allocation4], 0  ;;  %s417_s12 = smov [#allocation2]   ;;  %s418_s14 = smov [#allocation5]  }
   0x3   :  { %s17_s13 = sshll.u32 %s417_s12, 4  ;;  %s26_s15 = sshll.u32 %s418_s14, 4  ;;  %s18_s13 = int_to_ptr.vmem [resolvable:$true] %s17_s13  ;;  %s27_s15 = int_to_ptr.vmem [resolvable:$true] %s26_s15 }
   0x4   :  { %s359_s16 = scalar_lea.vmem %s18_s13, 384  ;;  %p364_p1 = scmp.lt.s32.totalorder %s18_s13, %s18_s13 }
   0x5   :  { %p360_p0 = scmp.ne.s32.totalorder %s18_s13, %s359_s16  ;;  %p365_p2 = scmp.lt.s32.totalorder %s359_s16, %s359_s16 }
   0x7   :  { %p366_p3 = por %p365_p2, %p364_p1 }
   0x9   :  { %p367_p4 = pnand %p366_p3, %p360_p0 }
   0xb   :  { %370 = shalt.err (!%p367_p4)
}
   0xc   :  { %20 = dma.hbm_to_vmem [thread:$0]  %s473_s0, 384, %s18_s13, [#allocation3]  }
   0xd   :  { %s379_s19 = scalar_lea.vmem %s27_s15, 6144  ;;  %p384_p6 = scmp.lt.s32.totalorder %s27_s15, %s27_s15 }
   0xe   :  { %p380_p5 = scmp.ne.s32.totalorder %s27_s15, %s379_s19  ;;  %p385_p7 = scmp.lt.s32.totalorder %s379_s19, %s379_s19 }
  0x10   :  { %p386_p8 = por %p385_p7, %p384_p6 }
  0x12   :  { %p387_p9 = pnand %p386_p8, %p380_p5 }
  0x14   :  { %390 = shalt.err (!%p387_p9)
}
  0x15   :  { %s419_s20 = smov 128   ;;  %s420_s21 = smov 8  }
  0x16   :  { %32 = dma.hbm_to_vmem [thread:$0]  %s474_s1, 6144, %s27_s15, [#allocation6], %s419_s20, %s419_s20, %s420_s21  }
  0x17   :  { %411 = dma.done.wait [#allocation3], 384  }
  0x18   :  { %412 = vsyncadd [#allocation3], 4294966912 }
  0x19   :  { %413 = dma.done.wait [#allocation6], 6144  }
  0x1a   :  { %414 = vsyncadd [#allocation6], 4294961152  ;;  %v421_v0 = vmov 0.0   ;;  %vm422_vm0 = vmmov 0   ;;  %v75_v1 = vld [vmem:[#allocation5 + $0xf8] sm:$0xff]  ;;  %v74_v3 = vld [vmem:[#allocation5 + $0xf0] sm:$0xff] }
  0x1b   :  { %309 = vmatprep.subr.mxu1 %v421_v0  ;;  %341 = vmatprep.mubr.msk.f32.mxu1 %vm422_vm0, %v421_v0  ;;  %v59_v2 = vld [vmem:[#allocation5 + $0x78] sm:$0xff]  ;;  %v58_v4 = vld [vmem:[#allocation5 + $0x70] sm:$0xff]  ;;  %v73_v5 = vld [vmem:[#allocation5 + $0xe8] sm:$0xff]  ;;  %s423_s24 = smov [#allocation7]  }
  0x1c   :  { %257 = vmatprep.subr.mxu0 %v75_v1  ;;  %v91_v6 = vld [vmem:[#allocation5 + $0x178] sm:$0xff]  ;;  %v57_v7 = vld [vmem:[#allocation5 + $0x68] sm:$0xff]  ;;  %v90_v8 = vld [vmem:[#allocation5 + $0x170] sm:$0xff]  ;;  %s246_s25 = sshll.u32 %s423_s24, 4  ;;  %s247_s25 = int_to_ptr.vmem [resolvable:$true] %s246_s25 }
  0x1d   :  { %258 = vmatpush3.msra.mxu0 %v59_v2  ;;  %310 = vmatpush3.msra.mxu1 %v91_v6  ;;  %v72_v9 = vld [vmem:[#allocation5 + $0xe0] sm:$0xff]  ;;  %v89_v10 = vld [vmem:[#allocation5 + $0x168] sm:$0xff]  ;;  %v71_v12 = vld [vmem:[#allocation5 + $0xd8] sm:$0xff]  ;;  %s391_s26 = scalar_lea.vmem %s247_s25, 128  ;;  %p396_p11 = scmp.lt.s32.totalorder %s247_s25, %s247_s25 }
  0x1e   :  { %259 = vmatprep.subr.mxu0 %v74_v3  ;;  %311 = vmatprep.subr.mxu1 %v421_v0  ;;  %v56_v11 = vld [vmem:[#allocation5 + $0x60] sm:$0xff]  ;;  %v55_v14 = vld [vmem:[#allocation5 + $0x58] sm:$0xff]  ;;  %v70_v15 = vld [vmem:[#allocation5 + $0xd0] sm:$0xff]  ;;  %p392_p10 = scmp.ne.s32.totalorder %s247_s25, %s391_s26  ;;  %p397_p12 = scmp.lt.s32.totalorder %s391_s26, %s391_s26 }
  0x1f   :  { %260 = vmatpush3.msra.mxu0 %v58_v4  ;;  %312 = vmatpush3.msra.mxu1 %v90_v8  ;;  %v88_v13 = vld [vmem:[#allocation5 + $0x160] sm:$0xff]  ;;  %v87_v16 = vld [vmem:[#allocation5 + $0x158] sm:$0xff]  ;;  %v54_v17 = vld [vmem:[#allocation5 + $0x50] sm:$0xff] }
  0x20   :  { %261 = vmatprep.subr.mxu0 %v73_v5  ;;  %313 = vmatprep.subr.mxu1 %v421_v0  ;;  %v69_v18 = vld [vmem:[#allocation5 + $0xc8] sm:$0xff]  ;;  %v86_v19 = vld [vmem:[#allocation5 + $0x150] sm:$0xff]  ;;  %v68_v21 = vld [vmem:[#allocation5 + $0xc0] sm:$0xff]  ;;  %p398_p13 = por %p397_p12, %p396_p11 }
  0x21   :  { %262 = vmatpush3.msra.mxu0 %v57_v7  ;;  %314 = vmatpush3.msra.mxu1 %v89_v10  ;;  %v53_v20 = vld [vmem:[#allocation5 + $0x48] sm:$0xff]  ;;  %v52_v23 = vld [vmem:[#allocation5 + $0x40] sm:$0xff]  ;;  %v67_v24 = vld [vmem:[#allocation5 + $0xb8] sm:$0xff] }
  0x22   :  { %263 = vmatprep.subr.mxu0 %v72_v9  ;;  %315 = vmatprep.subr.mxu1 %v421_v0  ;;  %v85_v22 = vld [vmem:[#allocation5 + $0x148] sm:$0xff]  ;;  %v84_v25 = vld [vmem:[#allocation5 + $0x140] sm:$0xff]  ;;  %v51_v26 = vld [vmem:[#allocation5 + $0x38] sm:$0xff]  ;;  %p399_p0 = pnand %p398_p13, %p392_p10 }
  0x23   :  { %264 = vmatpush3.msra.mxu0 %v56_v11  ;;  %316 = vmatpush3.msra.mxu1 %v88_v13  ;;  %v66_v27 = vld [vmem:[#allocation5 + $0xb0] sm:$0xff]  ;;  %v83_v28 = vld [vmem:[#allocation5 + $0x138] sm:$0xff]  ;;  %v65_v30 = vld [vmem:[#allocation5 + $0xa8] sm:$0xff] }
  0x24   :  { %265 = vmatprep.subr.mxu0 %v71_v12  ;;  %317 = vmatprep.subr.mxu1 %v421_v0  ;;  %v50_v29 = vld [vmem:[#allocation5 + $0x30] sm:$0xff]  ;;  %v49_v32 = vld [vmem:[#allocation5 + $0x28] sm:$0xff]  ;;  %v64_v33 = vld [vmem:[#allocation5 + $0xa0] sm:$0xff] }
  0x25   :  { %266 = vmatpush3.msra.mxu0 %v55_v14  ;;  %318 = vmatpush3.msra.mxu1 %v87_v16  ;;  %v82_v31 = vld [vmem:[#allocation5 + $0x130] sm:$0xff]  ;;  %v81_v34 = vld [vmem:[#allocation5 + $0x128] sm:$0xff]  ;;  %v48_v35 = vld [vmem:[#allocation5 + $0x20] sm:$0xff] }
  0x26   :  { %267 = vmatprep.subr.mxu0 %v70_v15  ;;  %319 = vmatprep.subr.mxu1 %v421_v0  ;;  %v63_v36 = vld [vmem:[#allocation5 + $0x98] sm:$0xff]  ;;  %v80_v37 = vld [vmem:[#allocation5 + $0x120] sm:$0xff]  ;;  %v62_v39 = vld [vmem:[#allocation5 + $0x90] sm:$0xff] }
  0x27   :  { %268 = vmatpush3.msra.mxu0 %v54_v17  ;;  %320 = vmatpush3.msra.mxu1 %v86_v19  ;;  %v47_v38 = vld [vmem:[#allocation5 + $0x18] sm:$0xff]  ;;  %v46_v41 = vld [vmem:[#allocation5 + $0x10] sm:$0xff]  ;;  %v61_v42 = vld [vmem:[#allocation5 + $0x88] sm:$0xff] }
  0x28   :  { %269 = vmatprep.subr.mxu0 %v69_v18  ;;  %321 = vmatprep.subr.mxu1 %v421_v0  ;;  %v79_v40 = vld [vmem:[#allocation5 + $0x118] sm:$0xff]  ;;  %v42_v43 = vld [vmem:[#allocation2 + $0x8] sm:$0xff]  ;;  %v45_v44 = vld [vmem:[#allocation5 + $0x8] sm:$0xff] }
  0x29   :  { %270 = vmatpush3.msra.mxu0 %v53_v20  ;;  %322 = vmatpush3.msra.mxu1 %v85_v22  ;;  %v78_v45 = vld [vmem:[#allocation5 + $0x110] sm:$0xff]  ;;  %v60_v46 = vld [vmem:[#allocation5 + $0x80] sm:$0xff]  ;;  %v77_v48 = vld [vmem:[#allocation5 + $0x108] sm:$0xff] }
  0x2a   :  { %271 = vmatprep.subr.mxu0 %v68_v21  ;;  %323 = vmatprep.subr.mxu1 %v421_v0  ;;  %v44_v47 = vld [vmem:[#allocation5] sm:$0xff]  ;;  %v41_v49 = vld [vmem:[#allocation2] sm:$0xff]  ;;  %v43_v51 = vld [vmem:[#allocation2 + $0x10] sm:$0xff] }
  0x2b   :  { %272 = vmatpush3.msra.mxu0 %v52_v23  ;;  %324 = vmatpush3.msra.mxu1 %v84_v25  ;;  %v76_v50 = vld [vmem:[#allocation5 + $0x100] sm:$0xff]  ;;  %v256_v54 = vld [vmem:[%s475_s2] ss:$0 sm:$0xff] }
  0x2c   :  { %273 = vmatprep.subr.mxu0 %v67_v24  ;;  %325 = vmatprep.subr.mxu1 %v421_v0 }
  0x2d   :  { %274 = vmatpush3.msra.mxu0 %v51_v26  ;;  %326 = vmatpush3.msra.mxu1 %v83_v28 }
  0x2e   :  { %275 = vmatprep.subr.mxu0 %v66_v27  ;;  %327 = vmatprep.subr.mxu1 %v421_v0 }
  0x2f   :  { %276 = vmatpush3.msra.mxu0 %v50_v29  ;;  %328 = vmatpush3.msra.mxu1 %v82_v31 }
  0x30   :  { %277 = vmatprep.subr.mxu0 %v65_v30  ;;  %329 = vmatprep.subr.mxu1 %v421_v0 }
  0x31   :  { %278 = vmatpush3.msra.mxu0 %v49_v32  ;;  %330 = vmatpush3.msra.mxu1 %v81_v34 }
  0x32   :  { %279 = vmatprep.subr.mxu0 %v64_v33  ;;  %331 = vmatprep.subr.mxu1 %v421_v0 }
  0x33   :  { %280 = vmatpush3.msra.mxu0 %v48_v35  ;;  %332 = vmatpush3.msra.mxu1 %v80_v37 }
  0x34   :  { %281 = vmatprep.subr.mxu0 %v63_v36  ;;  %333 = vmatprep.subr.mxu1 %v421_v0 }
  0x35   :  { %282 = vmatpush3.msra.mxu0 %v47_v38  ;;  %334 = vmatpush3.msra.mxu1 %v79_v40 }
  0x36   :  { %283 = vmatprep.subr.mxu0 %v62_v39  ;;  %335 = vmatprep.subr.mxu1 %v421_v0 }
  0x37   :  { %284 = vmatpush3.msra.mxu0 %v46_v41  ;;  %163 = vmatprep.mubr.f32.mxu0 %v42_v43 }
  0x38   :  { %285 = vmatprep.subr.mxu0 %v61_v42  ;;  %336 = vmatpush3.msra.mxu1 %v78_v45 }
  0x39   :  { %286 = vmatpush3.msra.mxu0 %v45_v44  ;;  %337 = vmatprep.subr.mxu1 %v421_v0 }
  0x3a   :  { %287 = vmatprep.subr.mxu0 %v60_v46  ;;  %338 = vmatpush3.msra.mxu1 %v77_v48 }
  0x3b   :  { %288 = vmatpush3.msra.mxu0 %v44_v47  ;;  %339 = vmatprep.subr.mxu1 %v421_v0 }
  0x3c   :  { %164 = vmatmul.mubr.f32.vlgmr.msra.gmra.mxu0 %v41_v49  ;;  %340 = vmatpush3.msra.mxu1 %v76_v50 }
  0x3d   :  { %342 = vmatmul.mubr.f32.vlgmr.msra.gmra.mxu1 %v43_v51 }
  0xfc   :  { %v289_v52 = vpop.f32.mrf.mxu0 }
  0xfd   :  { %v235_v55 = vpop.f32.mrf.mxu1 }
  0xfe   :  { %v290_v53 = vpop.f32.mrf.mxu0 }
  0xff   :  { %v291_v56 = vadd.f32 %v290_v53, %v289_v52  ;;  %v343_v57 = vpop.f32.mrf.mxu1 }
 0x101   :  { %v166_v58 = vadd.f32 %v291_v56, %v256_v54 }
 0x103   :  { %v236_v59 = vadd.f32 %v235_v55, %v166_v58 }
 0x105   :  { %239 = vst [vmem:[#allocation7] sm:$0xff] %v236_v59 }
 0x106   :  { %402 = shalt.err (!%p399_p0)
}
 0x107   :  { %249 = dma.vmem_to_hbm [thread:$0]  %s247_s25, 128, %s476_s3, [#allocation4]  }
 0x108   :  { %415 = dma.done.wait [#allocation4], 128  }
 0x109   :  { %416 = vsyncadd [#allocation4], 4294967168 }
 0x10a   :  { %253 = vsyncpa [#allocation3], 1 }
 0x10b   :  { %254 = vsyncpa [#allocation6], 1 }
 0x10c   :  { %255 = vsyncpa [#allocation4], 1 }

</bundles_post_ra>
